<compile_context>
chip_gen: v7x
topology: tpu7x:2x2x1
jax: 0.10.0
libtpu: 0.0.40
codegen_flags: <defaults>
</compile_context>

<pallas_src>
import functools

import jax
import jax.numpy as jnp
from jax.experimental import pallas as pl
from jax.experimental.pallas import tpu as pltpu

HID1 = 256
HID2 = 128
LN_EPS = 1e-5


def _round_up(x, m):
    return (x + m - 1) // m * m


def _layernorm(h, gamma, beta):
    # Fused one-pass statistics: var = E[h^2] - mu^2 (mathematically identical
    # to the biased variance PyTorch's LayerNorm uses).
    mu = jnp.mean(h, axis=-1, keepdims=True)
    ms = jnp.mean(h * h, axis=-1, keepdims=True)
    var = jnp.maximum(ms - mu * mu, 0.0)
    return (h - mu) * jax.lax.rsqrt(var + LN_EPS) * gamma + beta


def ankle_critic_kernel(s_ref, a_ref,
                        w1s_ref, w1a_ref, b1_ref, g1_ref, be1_ref,
                        w2_ref, b2_ref, g2_ref, be2_ref,
                        w3_ref, b3_ref,
                        out_ref):
    # ---- Linear(input_dim + 1, 256): state part on MXU + action rank-1 on VPU ----
    h = jnp.dot(s_ref[...], w1s_ref[...], preferred_element_type=jnp.float32)
    h = h + a_ref[...] * w1a_ref[...]            # (TB,1)*(1,256) rank-1 update, f32
    h = h + b1_ref[...]
    h = _layernorm(h, g1_ref[...], be1_ref[...])
    h = jnp.maximum(h, 0.0)

    # ---- Linear(256, 128) -> LayerNorm(128) -> ReLU ----
    h = jnp.dot(h.astype(jnp.bfloat16), w2_ref[...],
                preferred_element_type=jnp.float32) + b2_ref[...]
    h = _layernorm(h, g2_ref[...], be2_ref[...])
    h = jnp.maximum(h, 0.0)

    # ---- Linear(128, 1): N=1 -> VPU multiply + row reduction (no MXU) ----
    out = jnp.sum(h * w3_ref[...], axis=-1, keepdims=True) + b3_ref[...]
    out_ref[...] = out.astype(out_ref.dtype)


def init_params(key, input_dim):
    """Mimics PyTorch nn.Linear default init (uniform(-1/sqrt(fan_in), ...))
    and LayerNorm (gamma=1, beta=0). w1 is split into state rows / action row."""
    d_in = input_dim + 1
    ks = jax.random.split(key, 6)

    def lin(kw, kb, fan_in, fan_out):
        bound = 1.0 / jnp.sqrt(fan_in)
        w = jax.random.uniform(kw, (fan_in, fan_out), jnp.float32, -bound, bound)
        b = jax.random.uniform(kb, (1, fan_out), jnp.float32, -bound, bound)
        return w, b

    w1, b1 = lin(ks[0], ks[1], d_in, HID1)
    w2, b2 = lin(ks[2], ks[3], HID1, HID2)
    w3, b3 = lin(ks[4], ks[5], HID2, 1)
    return dict(
        w1_s=w1[:input_dim],                       # (input_dim, 256) state rows
        w1_a=w1[input_dim:],                       # (1, 256)         action row
        b1=b1,
        g1=jnp.ones((1, HID1), jnp.float32), be1=jnp.zeros((1, HID1), jnp.float32),
        w2=w2, b2=b2,
        g2=jnp.ones((1, HID2), jnp.float32), be2=jnp.zeros((1, HID2), jnp.float32),
        w3=w3.T,                                   # (1, 128) row vector
        b3=b3,                                     # (1, 1)
    )


@functools.partial(jax.jit, static_argnames=("block_batch",))
def ankle_critic_forward(state, action, params, block_batch=512):
    b, d = state.shape

    # Batch tile: multiple of 8 sublanes; sized so (x block + activations +
    # resident weights) x2 buffers stays far under the scoped-VMEM default on
    # all generations (incl. v7x's smaller VMEM).
    tb = min(block_batch, _round_up(b, 8))
    b_pad = _round_up(b, tb)
    grid = (b_pad // tb,)

    # bf16 MXU operands; everything elementwise / LN stays f32.
    state_p = jnp.pad(state, ((0, b_pad - b), (0, 0))).astype(jnp.bfloat16)
    action_p = jnp.pad(action, ((0, b_pad - b), (0, 0))).astype(jnp.float32)
    w1s = params["w1_s"].astype(jnp.bfloat16)
    w2 = params["w2"].astype(jnp.bfloat16)

    def batch_spec(shape):
        return pl.BlockSpec(shape, lambda i: (i, 0))

    def const_spec(shape):                   # same block every step -> VMEM resident
        return pl.BlockSpec(shape, lambda i: (0, 0))

    param_bytes = (w1s.size * 2 + w2.size * 2
                   + 4 * (params["w1_a"].size + params["b1"].size
                          + params["g1"].size + params["be1"].size
                          + params["b2"].size + params["g2"].size
                          + params["be2"].size + params["w3"].size
                          + params["b3"].size))
    cost = pl.CostEstimate(
        flops=2 * b_pad * (d * HID1 + HID1 * HID2 + HID1 + HID2),
        transcendentals=2 * b_pad,
        bytes_accessed=state_p.size * 2 + action_p.size * 4 + param_bytes + b_pad * 4,
    )

    out = pl.pallas_call(
        ankle_critic_kernel,
        out_shape=jax.ShapeDtypeStruct((b_pad, 1), jnp.float32),
        grid=grid,
        in_specs=[
            batch_spec((tb, d)),          # state block   (bf16)
            batch_spec((tb, 1)),          # action block  (f32)
            const_spec((d, HID1)),        # w1_s (bf16)
            const_spec((1, HID1)),        # w1_a
            const_spec((1, HID1)),        # b1
            const_spec((1, HID1)),        # g1
            const_spec((1, HID1)),        # be1
            const_spec((HID1, HID2)),     # w2 (bf16)
            const_spec((1, HID2)),        # b2
            const_spec((1, HID2)),        # g2
            const_spec((1, HID2)),        # be2
            const_spec((1, HID2)),        # w3 row
            const_spec((1, 1)),           # b3
        ],
        out_specs=batch_spec((tb, 1)),
        compiler_params=pltpu.CompilerParams(
            dimension_semantics=("parallel",)),
        cost_estimate=cost,
    )(state_p, action_p,
      w1s, params["w1_a"], params["b1"], params["g1"], params["be1"],
      w2, params["b2"], params["g2"], params["be2"],
      params["w3"], params["b3"])
    return out[:b]


def reference_forward(state, action, params):
    """Pure-JAX reference mirroring the kernel's math (bf16 MXU inputs, f32 LN)."""
    s = state.astype(jnp.bfloat16)
    a = action.astype(jnp.float32)
    h = jnp.dot(s, params["w1_s"].astype(jnp.bfloat16),
                preferred_element_type=jnp.float32)
    h = h + a * params["w1_a"] + params["b1"]
    h = _layernorm(h, params["g1"], params["be1"])
    h = jnp.maximum(h, 0.0)
    h = jnp.dot(h.astype(jnp.bfloat16), params["w2"].astype(jnp.bfloat16),
                preferred_element_type=jnp.float32) + params["b2"]
    h = _layernorm(h, params["g2"], params["be2"])
    h = jnp.maximum(h, 0.0)
    return jnp.sum(h * params["w3"], axis=-1, keepdims=True) + params["b3"]


if __name__ == "__main__":
    key = jax.random.PRNGKey(0)
    k_p, k_s, k_a = jax.random.split(key, 3)

    batch = 8
    input_dim = 16   # state dim; action adds 1 feature -> 17 total

    params = init_params(k_p, input_dim)
    state = jax.random.normal(k_s, (batch, input_dim), jnp.float32)
    action = jax.random.normal(k_a, (batch, 1), jnp.float32)

    out = ankle_critic_forward(state, action, params)
    out = jax.block_until_ready(out)

    ref = reference_forward(state, action, params)
    assert out.shape == (batch, 1), out.shape
    assert jnp.allclose(out, ref, atol=1e-3, rtol=1e-3), (out, ref)

    print("KERNEL_OK")
</pallas_src>

<mosaic_0001>
module attributes {stable_mosaic.version = 11 : i64} {
  func.func @ankle_critic_kernel(%arg0: i32, %arg1: memref<8x16xbf16, #tpu.memory_space<vmem>>, %arg2: memref<8x1xf32, #tpu.memory_space<vmem>>, %arg3: memref<16x256xbf16, #tpu.memory_space<vmem>>, %arg4: memref<1x256xf32, #tpu.memory_space<vmem>>, %arg5: memref<1x256xf32, #tpu.memory_space<vmem>>, %arg6: memref<1x256xf32, #tpu.memory_space<vmem>>, %arg7: memref<1x256xf32, #tpu.memory_space<vmem>>, %arg8: memref<256x128xbf16, #tpu.memory_space<vmem>>, %arg9: memref<1x128xf32, #tpu.memory_space<vmem>>, %arg10: memref<1x128xf32, #tpu.memory_space<vmem>>, %arg11: memref<1x128xf32, #tpu.memory_space<vmem>>, %arg12: memref<1x128xf32, #tpu.memory_space<vmem>>, %arg13: memref<1x1xf32, #tpu.memory_space<vmem>>, %arg14: memref<8x1xf32, #tpu.memory_space<vmem>>) attributes {dimension_semantics = [#tpu.dimension_semantics<parallel>], iteration_bounds = array<i64: 1>, scalar_prefetch = 0 : i64, scratch_operands = 0 : i64, tpu.core_type = #tpu.core_type<tc>, window_params = [{transform_indices = @transform_0, window_bounds = array<i64: 8, 16>}, {transform_indices = @transform_1, window_bounds = array<i64: 8, 1>}, {pipeline_mode = #tpu.pipeline_mode<synchronous>, transform_indices = @transform_2, window_bounds = array<i64: 16, 256>}, {pipeline_mode = #tpu.pipeline_mode<synchronous>, transform_indices = @transform_3, window_bounds = array<i64: 1, 256>}, {pipeline_mode = #tpu.pipeline_mode<synchronous>, transform_indices = @transform_4, window_bounds = array<i64: 1, 256>}, {pipeline_mode = #tpu.pipeline_mode<synchronous>, transform_indices = @transform_5, window_bounds = array<i64: 1, 256>}, {pipeline_mode = #tpu.pipeline_mode<synchronous>, transform_indices = @transform_6, window_bounds = array<i64: 1, 256>}, {pipeline_mode = #tpu.pipeline_mode<synchronous>, transform_indices = @transform_7, window_bounds = array<i64: 256, 128>}, {pipeline_mode = #tpu.pipeline_mode<synchronous>, transform_indices = @transform_8, window_bounds = array<i64: 1, 128>}, {pipeline_mode = #tpu.pipeline_mode<synchronous>, transform_indices = @transform_9, window_bounds = array<i64: 1, 128>}, {pipeline_mode = #tpu.pipeline_mode<synchronous>, transform_indices = @transform_10, window_bounds = array<i64: 1, 128>}, {pipeline_mode = #tpu.pipeline_mode<synchronous>, transform_indices = @transform_11, window_bounds = array<i64: 1, 128>}, {pipeline_mode = #tpu.pipeline_mode<synchronous>, transform_indices = @transform_12, window_bounds = array<i64: 1, 1>}, {transform_indices = @transform_13, window_bounds = array<i64: 8, 1>}]} {
    %c0 = arith.constant 0 : index
    %c0_0 = arith.constant 0 : index
    %0 = vector.load %arg1[%c0, %c0_0] : memref<8x16xbf16, #tpu.memory_space<vmem>>, vector<8x16xbf16>
    %c0_1 = arith.constant 0 : index
    %c0_2 = arith.constant 0 : index
    %1 = vector.load %arg3[%c0_1, %c0_2] : memref<16x256xbf16, #tpu.memory_space<vmem>>, vector<16x256xbf16>
    %cst = arith.constant dense<0.000000e+00> : vector<8x256xf32>
    %2 = tpu.matmul %0, %1, %cst {dimension_numbers = #tpu.dot_dimension_numbers<[1], [0], [0], [1], [0, 0, 1, 1], [], []>} : vector<8x16xbf16>, vector<16x256xbf16>, vector<8x256xf32> -> vector<8x256xf32>
    %c0_3 = arith.constant 0 : index
    %c0_4 = arith.constant 0 : index
    %3 = vector.load %arg2[%c0_3, %c0_4] : memref<8x1xf32, #tpu.memory_space<vmem>>, vector<8x1xf32>
    %c0_5 = arith.constant 0 : index
    %c0_6 = arith.constant 0 : index
    %4 = vector.load %arg4[%c0_5, %c0_6] : memref<1x256xf32, #tpu.memory_space<vmem>>, vector<1x256xf32>
    %5 = vector.broadcast %3 : vector<8x1xf32> to vector<8x256xf32>
    %6 = vector.broadcast %4 : vector<1x256xf32> to vector<8x256xf32>
    %7 = arith.mulf %5, %6 : vector<8x256xf32>
    %8 = arith.addf %2, %7 : vector<8x256xf32>
    %c0_7 = arith.constant 0 : index
    %c0_8 = arith.constant 0 : index
    %9 = vector.load %arg5[%c0_7, %c0_8] : memref<1x256xf32, #tpu.memory_space<vmem>>, vector<1x256xf32>
    %10 = vector.broadcast %9 : vector<1x256xf32> to vector<8x256xf32>
    %11 = arith.addf %8, %10 : vector<8x256xf32>
    %c0_9 = arith.constant 0 : index
    %c0_10 = arith.constant 0 : index
    %12 = vector.load %arg6[%c0_9, %c0_10] : memref<1x256xf32, #tpu.memory_space<vmem>>, vector<1x256xf32>
    %c0_11 = arith.constant 0 : index
    %c0_12 = arith.constant 0 : index
    %13 = vector.load %arg7[%c0_11, %c0_12] : memref<1x256xf32, #tpu.memory_space<vmem>>, vector<1x256xf32>
    %cst_13 = arith.constant dense<0.000000e+00> : vector<8xf32>
    %14 = vector.multi_reduction <add>, %11, %cst_13 [1] : vector<8x256xf32> to vector<8xf32>
    %15 = vector.shape_cast %14 : vector<8xf32> to vector<8x1xf32>
    %cst_14 = arith.constant 2.560000e+02 : f32
    %16 = vector.broadcast %cst_14 : f32 to vector<8x1xf32>
    %17 = arith.divf %15, %16 : vector<8x1xf32>
    %18 = arith.mulf %11, %11 : vector<8x256xf32>
    %cst_15 = arith.constant dense<0.000000e+00> : vector<8xf32>
    %19 = vector.multi_reduction <add>, %18, %cst_15 [1] : vector<8x256xf32> to vector<8xf32>
    %20 = vector.shape_cast %19 : vector<8xf32> to vector<8x1xf32>
    %cst_16 = arith.constant 2.560000e+02 : f32
    %21 = vector.broadcast %cst_16 : f32 to vector<8x1xf32>
    %22 = arith.divf %20, %21 : vector<8x1xf32>
    %23 = arith.mulf %17, %17 : vector<8x1xf32>
    %24 = arith.subf %22, %23 : vector<8x1xf32>
    %cst_17 = arith.constant 0.000000e+00 : f32
    %25 = vector.broadcast %cst_17 : f32 to vector<8x1xf32>
    %26 = arith.maximumf %24, %25 : vector<8x1xf32>
    %27 = vector.broadcast %17 : vector<8x1xf32> to vector<8x256xf32>
    %28 = arith.subf %11, %27 : vector<8x256xf32>
    %cst_18 = arith.constant 9.99999974E-6 : f32
    %29 = vector.broadcast %cst_18 : f32 to vector<8x1xf32>
    %30 = arith.addf %26, %29 : vector<8x1xf32>
    %31 = math.rsqrt %30 : vector<8x1xf32>
    %32 = vector.broadcast %31 : vector<8x1xf32> to vector<8x256xf32>
    %33 = arith.mulf %28, %32 : vector<8x256xf32>
    %34 = vector.broadcast %12 : vector<1x256xf32> to vector<8x256xf32>
    %35 = arith.mulf %33, %34 : vector<8x256xf32>
    %36 = vector.broadcast %13 : vector<1x256xf32> to vector<8x256xf32>
    %37 = arith.addf %35, %36 : vector<8x256xf32>
    %cst_19 = arith.constant 0.000000e+00 : f32
    %38 = vector.broadcast %cst_19 : f32 to vector<8x256xf32>
    %39 = arith.maximumf %37, %38 : vector<8x256xf32>
    %40 = arith.truncf %39 : vector<8x256xf32> to vector<8x256xbf16>
    %c0_20 = arith.constant 0 : index
    %c0_21 = arith.constant 0 : index
    %41 = vector.load %arg8[%c0_20, %c0_21] : memref<256x128xbf16, #tpu.memory_space<vmem>>, vector<256x128xbf16>
    %cst_22 = arith.constant dense<0.000000e+00> : vector<8x128xf32>
    %42 = tpu.matmul %40, %41, %cst_22 {dimension_numbers = #tpu.dot_dimension_numbers<[1], [0], [0], [1], [0, 0, 1, 1], [], []>} : vector<8x256xbf16>, vector<256x128xbf16>, vector<8x128xf32> -> vector<8x128xf32>
    %c0_23 = arith.constant 0 : index
    %c0_24 = arith.constant 0 : index
    %43 = vector.load %arg9[%c0_23, %c0_24] : memref<1x128xf32, #tpu.memory_space<vmem>>, vector<1x128xf32>
    %44 = vector.broadcast %43 : vector<1x128xf32> to vector<8x128xf32>
    %45 = arith.addf %42, %44 : vector<8x128xf32>
    %c0_25 = arith.constant 0 : index
    %c0_26 = arith.constant 0 : index
    %46 = vector.load %arg10[%c0_25, %c0_26] : memref<1x128xf32, #tpu.memory_space<vmem>>, vector<1x128xf32>
    %c0_27 = arith.constant 0 : index
    %c0_28 = arith.constant 0 : index
    %47 = vector.load %arg11[%c0_27, %c0_28] : memref<1x128xf32, #tpu.memory_space<vmem>>, vector<1x128xf32>
    %cst_29 = arith.constant dense<0.000000e+00> : vector<8xf32>
    %48 = vector.multi_reduction <add>, %45, %cst_29 [1] : vector<8x128xf32> to vector<8xf32>
    %49 = vector.shape_cast %48 : vector<8xf32> to vector<8x1xf32>
    %cst_30 = arith.constant 1.280000e+02 : f32
    %50 = vector.broadcast %cst_30 : f32 to vector<8x1xf32>
    %51 = arith.divf %49, %50 : vector<8x1xf32>
    %52 = arith.mulf %45, %45 : vector<8x128xf32>
    %cst_31 = arith.constant dense<0.000000e+00> : vector<8xf32>
    %53 = vector.multi_reduction <add>, %52, %cst_31 [1] : vector<8x128xf32> to vector<8xf32>
    %54 = vector.shape_cast %53 : vector<8xf32> to vector<8x1xf32>
    %cst_32 = arith.constant 1.280000e+02 : f32
    %55 = vector.broadcast %cst_32 : f32 to vector<8x1xf32>
    %56 = arith.divf %54, %55 : vector<8x1xf32>
    %57 = arith.mulf %51, %51 : vector<8x1xf32>
    %58 = arith.subf %56, %57 : vector<8x1xf32>
    %cst_33 = arith.constant 0.000000e+00 : f32
    %59 = vector.broadcast %cst_33 : f32 to vector<8x1xf32>
    %60 = arith.maximumf %58, %59 : vector<8x1xf32>
    %61 = vector.broadcast %51 : vector<8x1xf32> to vector<8x128xf32>
    %62 = arith.subf %45, %61 : vector<8x128xf32>
    %cst_34 = arith.constant 9.99999974E-6 : f32
    %63 = vector.broadcast %cst_34 : f32 to vector<8x1xf32>
    %64 = arith.addf %60, %63 : vector<8x1xf32>
    %65 = math.rsqrt %64 : vector<8x1xf32>
    %66 = vector.broadcast %65 : vector<8x1xf32> to vector<8x128xf32>
    %67 = arith.mulf %62, %66 : vector<8x128xf32>
    %68 = vector.broadcast %46 : vector<1x128xf32> to vector<8x128xf32>
    %69 = arith.mulf %67, %68 : vector<8x128xf32>
    %70 = vector.broadcast %47 : vector<1x128xf32> to vector<8x128xf32>
    %71 = arith.addf %69, %70 : vector<8x128xf32>
    %cst_35 = arith.constant 0.000000e+00 : f32
    %72 = vector.broadcast %cst_35 : f32 to vector<8x128xf32>
    %73 = arith.maximumf %71, %72 : vector<8x128xf32>
    %c0_36 = arith.constant 0 : index
    %c0_37 = arith.constant 0 : index
    %74 = vector.load %arg12[%c0_36, %c0_37] : memref<1x128xf32, #tpu.memory_space<vmem>>, vector<1x128xf32>
    %75 = vector.broadcast %74 : vector<1x128xf32> to vector<8x128xf32>
    %76 = arith.mulf %73, %75 : vector<8x128xf32>
    %cst_38 = arith.constant dense<0.000000e+00> : vector<8xf32>
    %77 = vector.multi_reduction <add>, %76, %cst_38 [1] : vector<8x128xf32> to vector<8xf32>
    %78 = vector.shape_cast %77 : vector<8xf32> to vector<8x1xf32>
    %c0_39 = arith.constant 0 : index
    %c0_40 = arith.constant 0 : index
    %79 = vector.load %arg13[%c0_39, %c0_40] : memref<1x1xf32, #tpu.memory_space<vmem>>, vector<1x1xf32>
    %80 = vector.broadcast %79 : vector<1x1xf32> to vector<8x1xf32>
    %81 = arith.addf %78, %80 : vector<8x1xf32>
    %c0_41 = arith.constant 0 : index
    %c0_42 = arith.constant 0 : index
    %82 = vector.load %arg14[%c0_41, %c0_42] : memref<8x1xf32, #tpu.memory_space<vmem>>, vector<8x1xf32>
    tpu.vector_store %arg14[%c0_41, %c0_42], %81 {strides = array<i32>} : memref<8x1xf32, #tpu.memory_space<vmem>>, vector<8x1xf32>,
    return
  }
  func.func @transform_0(%arg0: i32) -> (i32, i32) {
    %c0_i32 = arith.constant 0 : i32
    %c0_i32_0 = arith.constant 0 : i32
    return %arg0, %c0_i32 : i32, i32
  }
  func.func @transform_1(%arg0: i32) -> (i32, i32) {
    %c0_i32 = arith.constant 0 : i32
    %c0_i32_0 = arith.constant 0 : i32
    return %arg0, %c0_i32 : i32, i32
  }
  func.func @transform_2(%arg0: i32) -> (i32, i32) {
    %c0_i32 = arith.constant 0 : i32
    %c0_i32_0 = arith.constant 0 : i32
    %c0_i32_1 = arith.constant 0 : i32
    return %c0_i32, %c0_i32_0 : i32, i32
  }
  func.func @transform_3(%arg0: i32) -> (i32, i32) {
    %c0_i32 = arith.constant 0 : i32
    %c0_i32_0 = arith.constant 0 : i32
    %c0_i32_1 = arith.constant 0 : i32
    return %c0_i32, %c0_i32_0 : i32, i32
  }
  func.func @transform_4(%arg0: i32) -> (i32, i32) {
    %c0_i32 = arith.constant 0 : i32
    %c0_i32_0 = arith.constant 0 : i32
    %c0_i32_1 = arith.constant 0 : i32
    return %c0_i32, %c0_i32_0 : i32, i32
  }
  func.func @transform_5(%arg0: i32) -> (i32, i32) {
    %c0_i32 = arith.constant 0 : i32
    %c0_i32_0 = arith.constant 0 : i32
    %c0_i32_1 = arith.constant 0 : i32
    return %c0_i32, %c0_i32_0 : i32, i32
  }
  func.func @transform_6(%arg0: i32) -> (i32, i32) {
    %c0_i32 = arith.constant 0 : i32
    %c0_i32_0 = arith.constant 0 : i32
    %c0_i32_1 = arith.constant 0 : i32
    return %c0_i32, %c0_i32_0 : i32, i32
  }
  func.func @transform_7(%arg0: i32) -> (i32, i32) {
    %c0_i32 = arith.constant 0 : i32
    %c0_i32_0 = arith.constant 0 : i32
    %c0_i32_1 = arith.constant 0 : i32
    return %c0_i32, %c0_i32_0 : i32, i32
  }
  func.func @transform_8(%arg0: i32) -> (i32, i32) {
    %c0_i32 = arith.constant 0 : i32
    %c0_i32_0 = arith.constant 0 : i32
    %c0_i32_1 = arith.constant 0 : i32
    return %c0_i32, %c0_i32_0 : i32, i32
  }
  func.func @transform_9(%arg0: i32) -> (i32, i32) {
    %c0_i32 = arith.constant 0 : i32
    %c0_i32_0 = arith.constant 0 : i32
    %c0_i32_1 = arith.constant 0 : i32
    return %c0_i32, %c0_i32_0 : i32, i32
  }
  func.func @transform_10(%arg0: i32) -> (i32, i32) {
    %c0_i32 = arith.constant 0 : i32
    %c0_i32_0 = arith.constant 0 : i32
    %c0_i32_1 = arith.constant 0 : i32
    return %c0_i32, %c0_i32_0 : i32, i32
  }
  func.func @transform_11(%arg0: i32) -> (i32, i32) {
    %c0_i32 = arith.constant 0 : i32
    %c0_i32_0 = arith.constant 0 : i32
    %c0_i32_1 = arith.constant 0 : i32
    return %c0_i32, %c0_i32_0 : i32, i32
  }
  func.func @transform_12(%arg0: i32) -> (i32, i32) {
    %c0_i32 = arith.constant 0 : i32
    %c0_i32_0 = arith.constant 0 : i32
    %c0_i32_1 = arith.constant 0 : i32
    return %c0_i32, %c0_i32_0 : i32, i32
  }
  func.func @transform_13(%arg0: i32) -> (i32, i32) {
    %c0_i32 = arith.constant 0 : i32
    %c0_i32_0 = arith.constant 0 : i32
    return %arg0, %c0_i32 : i32, i32
  }
}

</mosaic_0001>

<bundles_post_ra>
// kernel: ankle_critic_forward.1
= control target key start
LH: loop header
LB: loop body
LE: loop exit
PB: predicated region body
PF: predicated region fallthrough
CT: control target
= control target key end

     0   :  { %v493_v1 = vmov 0   ;;  %vm80_vm0 = vcmask 130048   ;;  %v58_v5 = vlaneseq  ;;  %vm416_vm1 = vcmask 7168   ;;  %s672_s2 = inlined_call_operand.vmem [shape: bf16[16,256], index: 2, kind: input, shape index: {}]   ;;  %s673_s1 = inlined_call_operand.vmem [shape: f32[8,1], index: 1, kind: input, shape index: {}]   ;;  %s674_s0 = inlined_call_operand.vmem [shape: bf16[8,16], index: 0, kind: input, shape index: {}]   ;;  %s675_s3 = inlined_call_operand.vmem [shape: f32[1,256], index: 3, kind: input, shape index: {}]   ;;  %s676_s4 = inlined_call_operand.vmem [shape: f32[1,256], index: 4, kind: input, shape index: {}]   ;;  %s677_s7 = inlined_call_operand.vmem [shape: bf16[256,128], index: 7, kind: input, shape index: {}]   ;;  %s678_s5 = inlined_call_operand.vmem [shape: f32[1,256], index: 5, kind: input, shape index: {}]   ;;  %s679_s6 = inlined_call_operand.vmem [shape: f32[1,256], index: 6, kind: input, shape index: {}]   ;;  %s680_s8 = inlined_call_operand.vmem [shape: f32[1,128], index: 8, kind: input, shape index: {}]   ;;  %s681_s12 = inlined_call_operand.<no memory space> [shape: f32[1,1], index: 12, kind: input, shape index: {}]   ;;  %s682_s9 = inlined_call_operand.vmem [shape: f32[1,128], index: 9, kind: input, shape index: {}]   ;;  %s683_s10 = inlined_call_operand.vmem [shape: f32[1,128], index: 10, kind: input, shape index: {}]   ;;  %s684_s11 = inlined_call_operand.vmem [shape: f32[1,128], index: 11, kind: input, shape index: {}]   ;;  %s685_s13 = inlined_call_operand.vmem [shape: f32[8,1], index: 13, kind: output, shape index: {}]  }
   0x1   :  { %v470_v0 = vld [vmem:[%s672_s2 + $0x4] ss:$8 sps:$4 sm:$0xff]   ;;  %116 = vmatprep.mubr.bf16.mxu0 %v493_v1  ;;  %469 = vset.pattern.permute.xlu0 %v493_v1  ;;  %v472_v2 = vld [vmem:[%s672_s2] ss:$8 sps:$4 sm:$0xff]   ;;  %v477_v34 = vld [vmem:[%s677_s7 + $0x50] sm:$0xff]  }
   0x2   :  { %v50_v3 = vld [vmem:[%s673_s1] sm:$0xff]  ;;  %84 = vmatprep.subr.bf16.mxu0 %v470_v0  ;;  %v59_v6 = vshrl.u32 %v58_v5, 7  ;;  %v475_v32 = vld [vmem:[%s677_s7 + $0x48] sm:$0xff]   ;;  %v478_v35 = vld [vmem:[%s677_s7 + $0x10] sm:$0xff]  }
   0x3   :  { %54 = vperm.xlu0 %469, %v50_v3   ;;  %85 = vmatpush1.bf16.msra.mxu0 %v472_v2  ;;  %v47_v4 = vld [vmem:[%s674_s0] sm:$0xf]  ;;  %v476_v33 = vld [vmem:[%s677_s7 + $0x8] sm:$0xff]   ;;  %v479_v36 = vld [vmem:[%s677_s7 + $0x58] sm:$0xff]  }
   0x4   :  { %v576_v7 = vsub.s32 0, %v59_v6  ;;  %v51_v8 = vld [vmem:[%s675_s3] sm:$0x3]  ;;  %v581_v9 = vsub.s32 1, %v59_v6  ;;  %v480_v37 = vld [vmem:[%s677_s7 + $0x18] sm:$0xff]   ;;  %v483_v40 = vld [vmem:[%s677_s7 + $0x68] sm:$0xff]  }
   0x5   :  { %v125_v13 = vld [vmem:[%s676_s4] sm:$0x3]  ;;  %v484_v41 = vld [vmem:[%s677_s7 + $0x28] sm:$0xff]   ;;  %v485_v42 = vld [vmem:[%s677_s7 + $0x70] sm:$0xff]  }
   0x6   :  { %424 = vmatmul.mubr.msk.bf16.vlgmr.msra.gmra.mrb[0].mxu0 %vm80_vm0, %v47_v4  ;;  %v61_v10 = vrot.slane %v51_v8, %v576_v7  ;;  %v65_v11 = vrot.slane %v51_v8, %v581_v9  ;;  %v130_v16 = vrot.slane %v125_v13, %v576_v7  ;;  %v134_v18 = vrot.slane %v125_v13, %v581_v9  ;;  %v473_v30 = vld [vmem:[%s677_s7 + $0x40] sm:$0xff]   ;;  %v486_v43 = vld [vmem:[%s677_s7 + $0x30] sm:$0xff]   ;;  %v487_v44 = vld [vmem:[%s677_s7 + $0x78] sm:$0xff]  }
   0x7   :  { %v474_v31 = vld [vmem:[%s677_s7] sm:$0xff]   ;;  %446 = vmatprep.subr.bf16.mxu1 %v473_v30  ;;  %v488_v45 = vld [vmem:[%s677_s7 + $0x38] sm:$0xff]  }
   0x8   :  { %447 = vmatpush3.bf16.msra.mxu1 %v474_v31  ;;  %v481_v38 = vld [vmem:[%s677_s7 + $0x60] sm:$0xff]  }
   0x9   :  { %448 = vmatprep.subr.bf16.mxu1 %v475_v32  ;;  %v482_v39 = vld [vmem:[%s677_s7 + $0x20] sm:$0xff]  }
   0xa   :  { %v139_v54 = vld [vmem:[%s678_s5] sm:$0x3] }
   0xb   :  { %v140_v55 = vld [vmem:[%s679_s6] sm:$0x3]  ;;  %v165_v58 = vrot.slane %v139_v54, %v576_v7  ;;  %v169_v59 = vrot.slane %v139_v54, %v581_v9 }
   0xc   :  { %449 = vmatpush3.bf16.msra.mxu1 %v476_v33  ;;  %v178_v62 = vrot.slane %v140_v55, %v576_v7  ;;  %v182_v63 = vrot.slane %v140_v55, %v581_v9  ;;  %v443_v30 = vld [vmem:[%s683_s10] ss:$0 sm:$0xff] }
   0xd   :  { %450 = vmatprep.subr.bf16.mxu1 %v477_v34  ;;  %v444_v33 = vld [vmem:[%s684_s11] ss:$0 sm:$0xff] }
  0x10   :  { %451 = vmatpush3.bf16.msra.mxu1 %v478_v35 }
  0x11   :  { %452 = vmatprep.subr.bf16.mxu1 %v479_v36 }
  0x14   :  { %453 = vmatpush3.bf16.msra.mxu1 %v480_v37 }
  0x15   :  { %454 = vmatprep.subr.bf16.mxu1 %v481_v38 }
  0x18   :  { %455 = vmatpush3.bf16.msra.mxu1 %v482_v39 }
  0x19   :  { %456 = vmatprep.subr.bf16.mxu1 %v483_v40 }
  0x1c   :  { %457 = vmatpush3.bf16.msra.mxu1 %v484_v41 }
  0x1d   :  { %458 = vmatprep.subr.bf16.mxu1 %v485_v42 }
  0x20   :  { %459 = vmatpush3.bf16.msra.mxu1 %v486_v43 }
  0x21   :  { %460 = vmatprep.subr.bf16.mxu1 %v487_v44 }
  0x24   :  { %461 = vmatpush3.bf16.msra.mxu1 %v488_v45 }
  0x82   :  { %v55_v12 = vpop.permute.xlu0 %54 }
  0x83   :  { %v68_v14 = vmul.f32 %v61_v10, %v55_v12  ;;  %v69_v15 = vmul.f32 %v65_v11, %v55_v12  ;;  %v425_v12 = vld [vmem:[%s680_s8] ss:$0 sm:$0xff] }
  0xd9   :  { %v118_v17 = vpop.f32.mrb[0].mxu0 }
  0xda   :  { %v119_v19 = vadd.f32 %v118_v17, %v68_v14  ;;  %v120_v20 = vpop.f32.mrb[1].mxu0  ;;  %v18_v17 = vstv %s681_s12 }
  0xdb   :  { %v121_v21 = vadd.f32 %v120_v20, %v69_v15  ;;  %v122_v22 = vpop.f32.mrb[2].mxu0  ;;  %19 = vst [vmem:[#allocation2] sm:$0x1] %v18_v17 }
  0xdc   :  { %v590_v23 = vadd.f32 %v130_v16, %v119_v19  ;;  %v123_v24 = vpop.f32.mrb[3].mxu0 }
  0xdd   :  { %v138_v25 = vadd.f32 %v134_v18, %v121_v21 }
  0xde   :  { %v146_v26 = vmul.f32 %v590_v23, %v590_v23 }
  0xdf   :  { %v141_v27 = vadd.f32 %v138_v25, %v590_v23  ;;  %v147_v28 = vmul.f32 %v138_v25, %v138_v25 }
  0xe1   :  { %142 = vadd.xlane.f32.xlu0 %v141_v27  ;;  %v148_v29 = vadd.f32 %v147_v28, %v146_v26  ;;  %v442_v28 = vld [vmem:[%s682_s9] ss:$0 sm:$0xff] }
  0xe2   :  { %v445_v36 = vld [vmem:[#allocation2] ss:$0 sm:$0xff] }
  0xe3   :  { %149 = vadd.xlane.f32.xlu1 %v148_v29 }
 0x16e   :  { %v143_v46 = vpop.xlane.xlu0 %142 }
 0x16f   :  { %v145_v47 = vmul.f32 0.00390625, %v143_v46 }
 0x170   :  { %v150_v48 = vpop.xlane.xlu1 %149 }
 0x171   :  { %v152_v49 = vmul.f32 %v145_v47, %v145_v47  ;;  %v151_v50 = vmul.f32 0.00390625, %v150_v48  ;;  %v155_v56 = vsub.f32 %v590_v23, %v145_v47  ;;  %v156_v57 = vsub.f32 %v138_v25, %v145_v47 }
 0x173   :  { %v153_v51 = vsub.f32 %v151_v50, %v152_v49 }
 0x175   :  { %v154_v52 = vmax.f32 %v153_v51, 0.0 }
 0x177   :  { %v157_v53 = vadd.f32 1e-05, %v154_v52 }
 0x179   :  { %489 = vrsqrt.f32 %v157_v53 }
 0x183   :  { %v490_v60 = vpop.eup %489 }
 0x184   :  { %v160_v61 = vmul.f32 %v490_v60, %v156_v57  ;;  %v159_v0 = vmul.f32 %v490_v60, %v155_v56 }
 0x186   :  { %v173_v1 = vmul.f32 %v169_v59, %v160_v61  ;;  %v172_v2 = vmul.f32 %v165_v58, %v159_v0 }
 0x188   :  { %v186_v3 = vadd.f32 %v182_v63, %v173_v1  ;;  %v185_v4 = vadd.f32 %v178_v62, %v172_v2 }
 0x18a   :  { %v188_v5 = vmax.f32 %v186_v3, 0.0  ;;  %v187_v6 = vmax.f32 %v185_v4, 0.0 }
 0x18c   :  { %v190_v8 = vpack.c.bf16 %v188_v5, %v188_v5  ;;  %v189_v10 = vpack.c.bf16 %v187_v6, %v187_v6 }
 0x18e   :  { %358 = vmatprep.mubr.bf16.mxu1 %v190_v8 }
 0x18f   :  { %359 = vmatmul.mubr.bf16.vlgmr.msra.gmra.mrb[0].mxu1 %v189_v10 }
 0x262   :  { %v462_v11 = vpop.f32.mrb[0].mxu1 }
 0x263   :  { %v463_v13 = vpop.f32.mrb[1].mxu1 }
 0x264   :  { %v464_v7 = vadd.f32 %v463_v13, %v462_v11  ;;  %v465_v14 = vpop.f32.mrb[2].mxu1 }
 0x265   :  { %v466_v9 = vpop.f32.mrb[3].mxu1 }
 0x266   :  { %v361_v15 = vadd.f32 %v464_v7, %v425_v12 }
 0x268   :  { %368 = vadd.xlane.f32.xlu1 %v361_v15  ;;  %v372_v16 = vmul.f32 %v361_v15, %v361_v15 }
 0x26c   :  { %373 = vadd.xlane.f32.xlu1 %v372_v16 }
 0x2f5   :  { %v369_v18 = vpop.xlane.xlu1 %368 }
 0x2f6   :  { %v371_v19 = vmul.f32 0.0078125, %v369_v18 }
 0x2f8   :  { %v376_v21 = vmul.f32 %v371_v19, %v371_v19  ;;  %v379_v26 = vsub.f32 %v361_v15, %v371_v19 }
 0x2f9   :  { %v374_v20 = vpop.xlane.xlu1 %373 }
 0x2fa   :  { %v375_v22 = vmul.f32 0.0078125, %v374_v20 }
 0x2fc   :  { %v377_v23 = vsub.f32 %v375_v22, %v376_v21 }
 0x2fe   :  { %v378_v24 = vmax.f32 %v377_v23, 0.0 }
 0x300   :  { %v380_v25 = vadd.f32 1e-05, %v378_v24 }
 0x302   :  { %491 = vrsqrt.f32 %v380_v25 }
 0x30c   :  { %v492_v27 = vpop.eup %491 }
 0x30d   :  { %v382_v29 = vmul.f32 %v492_v27, %v379_v26 }
 0x30f   :  { %v389_v31 = vmul.f32 %v442_v28, %v382_v29 }
 0x311   :  { %v396_v32 = vadd.f32 %v443_v30, %v389_v31 }
 0x313   :  { %v397_v34 = vmax.f32 %v396_v32, 0.0 }
 0x315   :  { %v405_v35 = vmul.f32 %v444_v33, %v397_v34 }
 0x317   :  { %406 = vadd.xlane.f32.xlu1 %v405_v35 }
 0x3a4   :  { %v407_v37 = vpop.xlane.xlu1 %406 }
 0x3a5   :  { %v415_v38 = vadd.f32 %v445_v36, %v407_v37 }
 0x3a7   :  { %417 = vst.msk [vmem:[%s685_s13] sm:$0xff] %vm416_vm1, %v415_v38 }

</bundles_post_ra>
